<compile_context>
chip_gen: v7x
topology: tpu7x:2x2x1
jax: 0.10.0
libtpu: 0.0.40
codegen_flags: <defaults>
</compile_context>

<pallas_src>
import jax
import jax.numpy as jnp
from jax import lax
from jax.experimental import pallas as pl
from jax.experimental.pallas import tpu as pltpu

LN_EPS = 1e-5


def _round_up(x, m):
    return (x + m - 1) // m * m


def _mae_prompt_kernel(x_ref, w_ref, b_ref, g_ref, beta_ref, pos_ref, o_ref):
    # x_ref:    (R, C_mae)     row tile (flattened batch*token rows, or a token tile)
    # w_ref:    (C_mae, C_dec) q_proj weight (x @ W layout), grid-resident
    # b_ref:    (1, C_dec)     q_proj bias, resident
    # g_ref:    (1, C_dec)     LayerNorm gamma, resident
    # beta_ref: (1, C_dec)     LayerNorm beta, resident
    # pos_ref:  (R, C_dec)     positional-embedding rows for this tile (storage dtype)
    # o_ref:    (R, C_dec)     output tile
    #
    # bf16 operands, f32 accumulation on the MXU.
    q = jnp.dot(x_ref[...], w_ref[...], preferred_element_type=jnp.float32)
    q = q + b_ref[...].astype(jnp.float32)

    # LayerNorm over the feature (last) dim, f32 math (two-pass variance: no
    # mean(q^2)-mu^2 cancellation risk; VPU/XLU is not the binding slot here).
    mu = jnp.mean(q, axis=-1, keepdims=True)
    var = jnp.mean(jnp.square(q - mu), axis=-1, keepdims=True)
    qn = (q - mu) * lax.rsqrt(var + LN_EPS)

    # Dropout is identity in eval mode.
    out = (qn * g_ref[...].astype(jnp.float32)
           + beta_ref[...].astype(jnp.float32)
           + pos_ref[...].astype(jnp.float32))
    o_ref[...] = out.astype(o_ref.dtype)


def mae_prompt_encoder_forward(mae_tokens, w, b, ln_gamma, ln_beta, pos_embed,
                               *, target_rows=512, out_dtype=None,
                               mxu_dtype=jnp.bfloat16):
    """mae_tokens: (B, N, mae_dim). Returns (B, N, decoder_dim)."""
    B, N, C_mae = mae_tokens.shape
    C_dec = w.shape[1]
    out_dtype = mae_tokens.dtype if out_dtype is None else out_dtype

    # 16-row granule covers both f32 (8) and bf16 (16) sublane packing, so every
    # row tile and the flattened (batch*token) merge stay layout-aligned.
    GR = 16
    target_rows = max(GR, _round_up(target_rows, GR))

    # Feed the MXU 16-bit operands (f32 accumulation inside the kernel).
    x = mae_tokens.astype(mxu_dtype) if (mxu_dtype is not None and
                                         mae_tokens.dtype != mxu_dtype) else mae_tokens
    w_m = w.astype(x.dtype) if w.dtype != x.dtype else w

    b2d = b.reshape(1, C_dec)
    g2d = ln_gamma.reshape(1, C_dec)
    beta2d = ln_beta.reshape(1, C_dec)

    # pos stays in its storage dtype; beta is NOT folded in the wrapper.
    pos0 = pos_embed[0, :N, :]

    if _round_up(N, GR) <= target_rows:
        # ---- batch-blocked rows: one grid step = TB whole batch elements ----
        N_pad = _round_up(N, GR)
        if N_pad != N:
            x = jnp.pad(x, ((0, 0), (0, N_pad - N), (0, 0)))
            pos = jnp.pad(pos0, ((0, N_pad - N), (0, 0)))
        else:
            pos = pos0

        tb = max(1, min(B, target_rows // N_pad))
        while B % tb:
            tb -= 1
        if B > 1 and B // tb < 2:
            # Prefer >=2 grid steps so megacore (v7x) has work to split.
            tb2 = tb
            while tb2 > 1 and (B % tb2 or B // tb2 < 2):
                tb2 -= 1
            tb = tb2

        rows = tb * N_pad
        x2d = x.reshape(B * N_pad, C_mae)              # contiguous merge: free
        pos_t = jnp.tile(pos, (tb, 1)) if tb > 1 else pos  # (rows, C_dec), tiny

        grid = (B // tb,)
        in_specs = [
            pl.BlockSpec((rows, C_mae), lambda i: (i, 0)),
            pl.BlockSpec((C_mae, C_dec), lambda i: (0, 0)),
            pl.BlockSpec((1, C_dec), lambda i: (0, 0)),
            pl.BlockSpec((1, C_dec), lambda i: (0, 0)),
            pl.BlockSpec((1, C_dec), lambda i: (0, 0)),
            # Constant block index -> fetched once, VMEM-resident for the grid.
            pl.BlockSpec((rows, C_dec), lambda i: (0, 0)),
        ]
        out_specs = pl.BlockSpec((rows, C_dec), lambda i: (i, 0))
        out_shape = jax.ShapeDtypeStruct((B * N_pad, C_dec), out_dtype)
        dim_sem = ("parallel",)
        args = (x2d, w_m, b2d, g2d, beta2d, pos_t)
    else:
        # ---- token-tiled rows; batch is the fast grid axis so the pos block ----
        # ---- index is constant across it (no per-batch re-DMA of pos).      ----
        tn = target_rows
        N_pad = _round_up(N, tn)
        if N_pad != N:
            x = jnp.pad(x, ((0, 0), (0, N_pad - N), (0, 0)))
            pos = jnp.pad(pos0, ((0, N_pad - N), (0, 0)))
        else:
            pos = pos0

        P = N_pad // tn
        grid = (P, B)
        in_specs = [
            pl.BlockSpec((None, tn, C_mae), lambda p, bi: (bi, p, 0)),
            pl.BlockSpec((C_mae, C_dec), lambda p, bi: (0, 0)),
            pl.BlockSpec((1, C_dec), lambda p, bi: (0, 0)),
            pl.BlockSpec((1, C_dec), lambda p, bi: (0, 0)),
            pl.BlockSpec((1, C_dec), lambda p, bi: (0, 0)),
            # Depends only on the outer (token-tile) index.
            pl.BlockSpec((tn, C_dec), lambda p, bi: (p, 0)),
        ]
        out_specs = pl.BlockSpec((None, tn, C_dec), lambda p, bi: (bi, p, 0))
        out_shape = jax.ShapeDtypeStruct((B, N_pad, C_dec), out_dtype)
        dim_sem = ("parallel", "parallel")
        args = (x, w_m, b2d, g2d, beta2d, pos)

    flops = 2 * B * N_pad * C_mae * C_dec
    bytes_accessed = (B * N_pad * C_mae * jnp.dtype(x.dtype).itemsize
                      + C_mae * C_dec * jnp.dtype(w_m.dtype).itemsize
                      + N_pad * C_dec * jnp.dtype(pos0.dtype).itemsize
                      + 3 * C_dec * 4
                      + B * N_pad * C_dec * jnp.dtype(out_dtype).itemsize)

    out = pl.pallas_call(
        _mae_prompt_kernel,
        out_shape=out_shape,
        grid_spec=pltpu.PrefetchScalarGridSpec(
            num_scalar_prefetch=0,
            grid=grid,
            in_specs=in_specs,
            out_specs=out_specs),
        compiler_params=pltpu.CompilerParams(
            dimension_semantics=dim_sem,
            vmem_limit_bytes=32 * 1024 * 1024),
        cost_estimate=pl.CostEstimate(
            flops=flops, transcendentals=B * N_pad,
            bytes_accessed=int(bytes_accessed)),
    )(*args)

    out = out.reshape(B, N_pad, C_dec)
    return out[:, :N, :]


def reference_forward(mae_tokens, w, b, ln_gamma, ln_beta, pos_embed):
    q = jnp.einsum("bnc,cd->bnd", mae_tokens.astype(jnp.float32),
                   w.astype(jnp.float32)) + b
    mu = jnp.mean(q, axis=-1, keepdims=True)
    var = jnp.mean(jnp.square(q - mu), axis=-1, keepdims=True)
    qn = (q - mu) / jnp.sqrt(var + LN_EPS)
    qn = qn * ln_gamma + ln_beta
    return qn + pos_embed[:, :q.shape[1], :]


if __name__ == "__main__":
    # Small shapes consistent with the module defaults (mae_dim=768,
    # decoder_dim=256); lane-dense feature dims (multiples of 128).
    B, N = 2, 32
    mae_dim, decoder_dim = 768, 256
    grid_size = 8  # grid_size * grid_size = 64 >= N

    key = jax.random.PRNGKey(0)
    k_x, k_w, k_b, k_pe = jax.random.split(key, 4)

    mae_tokens = jax.random.normal(k_x, (B, N, mae_dim), dtype=jnp.float32)

    # q_proj: Linear(mae_dim, decoder_dim). Weight stored transposed for x @ W.
    w = jax.random.normal(k_w, (mae_dim, decoder_dim), dtype=jnp.float32) * 0.02
    b = jax.random.normal(k_b, (decoder_dim,), dtype=jnp.float32) * 0.02
    # LayerNorm affine params (default init: gamma=1, beta=0).
    ln_gamma = jnp.ones((decoder_dim,), dtype=jnp.float32)
    ln_beta = jnp.zeros((decoder_dim,), dtype=jnp.float32)
    # Learned positional embedding (torch.randn equivalent).
    pos_embed = jax.random.normal(k_pe, (1, grid_size * grid_size, decoder_dim),
                                  dtype=jnp.float32)

    # TODO(synk): dropout (p=0.1) is identity (eval mode); the use_mlp=True branch
    # (off by default) is not implemented.

    out = mae_prompt_encoder_forward(mae_tokens, w, b, ln_gamma, ln_beta, pos_embed)
    out = jax.block_until_ready(out)

    ref = reference_forward(mae_tokens, w, b, ln_gamma, ln_beta, pos_embed)
    assert out.shape == (B, N, decoder_dim)
    # Tolerance accounts for the bf16 MXU operand path vs. the f32 reference
    # (f32 accumulation; errors after LayerNorm are ~1e-2 worst case).
    assert jnp.allclose(out, ref, atol=3e-2, rtol=3e-2), "mismatch vs reference"

    print("KERNEL_OK")
</pallas_src>

<mosaic_0001>
module attributes {stable_mosaic.version = 11 : i64} {
  func.func @_mae_prompt_kernel(%arg0: i32, %arg1: memref<32x768xbf16, #tpu.memory_space<vmem>>, %arg2: memref<768x256xbf16, #tpu.memory_space<vmem>>, %arg3: memref<1x256xf32, #tpu.memory_space<vmem>>, %arg4: memref<1x256xf32, #tpu.memory_space<vmem>>, %arg5: memref<1x256xf32, #tpu.memory_space<vmem>>, %arg6: memref<32x256xf32, #tpu.memory_space<vmem>>, %arg7: memref<32x256xf32, #tpu.memory_space<vmem>>) attributes {dimension_semantics = [#tpu.dimension_semantics<parallel>], iteration_bounds = array<i64: 2>, scalar_prefetch = 0 : i64, scratch_operands = 0 : i64, tpu.core_type = #tpu.core_type<tc>, window_params = [{transform_indices = @transform_0, window_bounds = array<i64: 32, 768>}, {pipeline_mode = #tpu.pipeline_mode<synchronous>, transform_indices = @transform_1, window_bounds = array<i64: 768, 256>}, {pipeline_mode = #tpu.pipeline_mode<synchronous>, transform_indices = @transform_2, window_bounds = array<i64: 1, 256>}, {pipeline_mode = #tpu.pipeline_mode<synchronous>, transform_indices = @transform_3, window_bounds = array<i64: 1, 256>}, {pipeline_mode = #tpu.pipeline_mode<synchronous>, transform_indices = @transform_4, window_bounds = array<i64: 1, 256>}, {pipeline_mode = #tpu.pipeline_mode<synchronous>, transform_indices = @transform_5, window_bounds = array<i64: 32, 256>}, {transform_indices = @transform_6, window_bounds = array<i64: 32, 256>}]} {
    %c0 = arith.constant 0 : index
    %c0_0 = arith.constant 0 : index
    %0 = vector.load %arg1[%c0, %c0_0] : memref<32x768xbf16, #tpu.memory_space<vmem>>, vector<32x768xbf16>
    %c0_1 = arith.constant 0 : index
    %c0_2 = arith.constant 0 : index
    %1 = vector.load %arg2[%c0_1, %c0_2] : memref<768x256xbf16, #tpu.memory_space<vmem>>, vector<768x256xbf16>
    %cst = arith.constant dense<0.000000e+00> : vector<32x256xf32>
    %2 = tpu.matmul %0, %1, %cst {dimension_numbers = #tpu.dot_dimension_numbers<[1], [0], [0], [1], [0, 0, 1, 1], [], []>} : vector<32x768xbf16>, vector<768x256xbf16>, vector<32x256xf32> -> vector<32x256xf32>
    %c0_3 = arith.constant 0 : index
    %c0_4 = arith.constant 0 : index
    %3 = vector.load %arg3[%c0_3, %c0_4] : memref<1x256xf32, #tpu.memory_space<vmem>>, vector<1x256xf32>
    %4 = vector.broadcast %3 : vector<1x256xf32> to vector<32x256xf32>
    %5 = arith.addf %2, %4 : vector<32x256xf32>
    %cst_5 = arith.constant dense<0.000000e+00> : vector<32xf32>
    %6 = vector.multi_reduction <add>, %5, %cst_5 [1] : vector<32x256xf32> to vector<32xf32>
    %7 = vector.shape_cast %6 : vector<32xf32> to vector<32x1xf32>
    %cst_6 = arith.constant 2.560000e+02 : f32
    %8 = vector.broadcast %cst_6 : f32 to vector<32x1xf32>
    %9 = arith.divf %7, %8 : vector<32x1xf32>
    %10 = vector.broadcast %9 : vector<32x1xf32> to vector<32x256xf32>
    %11 = arith.subf %5, %10 : vector<32x256xf32>
    %12 = arith.mulf %11, %11 : vector<32x256xf32>
    %cst_7 = arith.constant dense<0.000000e+00> : vector<32xf32>
    %13 = vector.multi_reduction <add>, %12, %cst_7 [1] : vector<32x256xf32> to vector<32xf32>
    %14 = vector.shape_cast %13 : vector<32xf32> to vector<32x1xf32>
    %cst_8 = arith.constant 2.560000e+02 : f32
    %15 = vector.broadcast %cst_8 : f32 to vector<32x1xf32>
    %16 = arith.divf %14, %15 : vector<32x1xf32>
    %17 = vector.broadcast %9 : vector<32x1xf32> to vector<32x256xf32>
    %18 = arith.subf %5, %17 : vector<32x256xf32>
    %cst_9 = arith.constant 9.99999974E-6 : f32
    %19 = vector.broadcast %cst_9 : f32 to vector<32x1xf32>
    %20 = arith.addf %16, %19 : vector<32x1xf32>
    %21 = math.rsqrt %20 : vector<32x1xf32>
    %22 = vector.broadcast %21 : vector<32x1xf32> to vector<32x256xf32>
    %23 = arith.mulf %18, %22 : vector<32x256xf32>
    %c0_10 = arith.constant 0 : index
    %c0_11 = arith.constant 0 : index
    %24 = vector.load %arg4[%c0_10, %c0_11] : memref<1x256xf32, #tpu.memory_space<vmem>>, vector<1x256xf32>
    %25 = vector.broadcast %24 : vector<1x256xf32> to vector<32x256xf32>
    %26 = arith.mulf %23, %25 : vector<32x256xf32>
    %c0_12 = arith.constant 0 : index
    %c0_13 = arith.constant 0 : index
    %27 = vector.load %arg5[%c0_12, %c0_13] : memref<1x256xf32, #tpu.memory_space<vmem>>, vector<1x256xf32>
    %28 = vector.broadcast %27 : vector<1x256xf32> to vector<32x256xf32>
    %29 = arith.addf %26, %28 : vector<32x256xf32>
    %c0_14 = arith.constant 0 : index
    %c0_15 = arith.constant 0 : index
    %30 = vector.load %arg6[%c0_14, %c0_15] : memref<32x256xf32, #tpu.memory_space<vmem>>, vector<32x256xf32>
    %31 = arith.addf %29, %30 : vector<32x256xf32>
    %c0_16 = arith.constant 0 : index
    %c0_17 = arith.constant 0 : index
    %32 = vector.load %arg7[%c0_16, %c0_17] : memref<32x256xf32, #tpu.memory_space<vmem>>, vector<32x256xf32>
    tpu.vector_store %arg7[%c0_16, %c0_17], %31 {strides = array<i32>} : memref<32x256xf32, #tpu.memory_space<vmem>>, vector<32x256xf32>,
    return
  }
  func.func @transform_0(%arg0: i32) -> (i32, i32) {
    %c0_i32 = arith.constant 0 : i32
    %c0_i32_0 = arith.constant 0 : i32
    return %arg0, %c0_i32 : i32, i32
  }
  func.func @transform_1(%arg0: i32) -> (i32, i32) {
    %c0_i32 = arith.constant 0 : i32
    %c0_i32_0 = arith.constant 0 : i32
    %c0_i32_1 = arith.constant 0 : i32
    return %c0_i32, %c0_i32_0 : i32, i32
  }
  func.func @transform_2(%arg0: i32) -> (i32, i32) {
    %c0_i32 = arith.constant 0 : i32
    %c0_i32_0 = arith.constant 0 : i32
    %c0_i32_1 = arith.constant 0 : i32
    return %c0_i32, %c0_i32_0 : i32, i32
  }
  func.func @transform_3(%arg0: i32) -> (i32, i32) {
    %c0_i32 = arith.constant 0 : i32
    %c0_i32_0 = arith.constant 0 : i32
    %c0_i32_1 = arith.constant 0 : i32
    return %c0_i32, %c0_i32_0 : i32, i32
  }
  func.func @transform_4(%arg0: i32) -> (i32, i32) {
    %c0_i32 = arith.constant 0 : i32
    %c0_i32_0 = arith.constant 0 : i32
    %c0_i32_1 = arith.constant 0 : i32
    return %c0_i32, %c0_i32_0 : i32, i32
  }
  func.func @transform_5(%arg0: i32) -> (i32, i32) {
    %c0_i32 = arith.constant 0 : i32
    %c0_i32_0 = arith.constant 0 : i32
    %c0_i32_1 = arith.constant 0 : i32
    return %c0_i32, %c0_i32_0 : i32, i32
  }
  func.func @transform_6(%arg0: i32) -> (i32, i32) {
    %c0_i32 = arith.constant 0 : i32
    %c0_i32_0 = arith.constant 0 : i32
    return %arg0, %c0_i32 : i32, i32
  }
}

</mosaic_0001>

<bundles_post_ra>
// kernel: tpu_custom_call.1
= control target key start
LH: loop header
LB: loop body
LE: loop exit
PB: predicated region body
PF: predicated region fallthrough
CT: control target
= control target key end

     0   :  { %11 = vsyncpa [#allocation3], 0  ;;  %s2272_s0 = inlined_call_operand.hbm [shape: bf16[64,768], index: 0, kind: input, shape index: {}]   ;;  %s2273_s1 = inlined_call_operand.hbm [shape: bf16[768,256], index: 1, kind: input, shape index: {}]   ;;  %s2274_s2 = inlined_call_operand.vmem [shape: f32[1,256], index: 2, kind: input, shape index: {}]   ;;  %s2275_s3 = inlined_call_operand.vmem [shape: f32[1,256], index: 3, kind: input, shape index: {}]   ;;  %s2276_s4 = inlined_call_operand.vmem [shape: f32[1,256], index: 4, kind: input, shape index: {}]   ;;  %s2277_s5 = inlined_call_operand.hbm [shape: f32[32,256], index: 5, kind: input, shape index: {}]   ;;  %s2278_s6 = inlined_call_operand.hbm [shape: f32[64,256], index: 6, kind: output, shape index: {}]  }
   0x1   :  { %13 = vsyncpa [#allocation3 + $0x1], 0 }
   0x2   :  { %14 = vsyncpa [#allocation6], 0 }
   0x3   :  { %15 = vsyncpa [#allocation4], 0 }
   0x4   :  { %17 = vsyncpa [#allocation4 + $0x1], 0  ;;  %s1994_s21 = smov 0   ;;  %s1996_s22 = smov 0  }
   0x5   :  { %s1998_s23 = smov 0   ;;  %s2000_s24 = smov 0  }
   0x6 LB: > { %s2015_s25 = sadd.s32 4294967295, %s1945_s24   ;;  %s1357_s26 = sadd.s32 4294967294, %s1945_s24   ;;  %s1945_s24 = sphi %s2000_s24, %s2298_s24   ;;  %s1941_s23 = sphi %s1998_s23, %s2297_s23   ;;  %s1937_s22 = sphi %s1996_s22, %s2296_s22   ;;  %s1933_s21 = sphi %s1994_s21, %s2295_s21  }
   0x7   : > { %p43_p0 = scmp.ne.s32.totalorder %s1937_s22, %s1933_s21  ;;  %p2279_p1 = scmp.eq.s32.totalorder %s2015_s25, 0 }
   0x8   : > { %p178_p3 = scmp.eq.s32.totalorder %s1357_s26, 1  ;;  %p1358_p5 = scmp.ge.s32.totalorder %s1945_s24, 1 }
   0x9   : > { %p2024_p4 = por %p2279_p1, %p43_p0  ;;  %p185_p7 = scmp.lt.s32.totalorder %s1945_s24, 3 }
   0xa   : > { %p2029_p6 = por %p178_p3, %p43_p0  ;;  %s1947_s30 = smov [#allocation5]  }
   0xb   : > { %s2282_s27 = scalar_select %p2024_p4, 1, 0 }
   0xc   : > { %s2283_s28 = scalar_select %p2029_p6, 1, 0 }
   0xd   : > { %p2034_p8 = pnand %p1358_p5, %p185_p7  ;;  %s197_s7 = sshll.u32 %s1947_s30, 4  ;;  %s2038_s7 = int_to_ptr.vmem [resolvable:$true] %s197_s7 }
   0xe   : > { %s1948_s9 = smov [#allocation7]   ;;  %s1789_s13 = scalar_lea.hbm %s2273_s1, 12288 }
   0xf   : > { %p1556_p9 = pneg %p2034_p8  ;;  %s219_s10 = sshll.u32 %s1948_s9, 4  ;;  %s2049_s10 = int_to_ptr.vmem [resolvable:$true] %s219_s10 }
  0x10   : > { %p1790_p12 = scmp.ne.s32.totalorder %s2273_s1, %s1789_s13  ;;  %p1796_p5 = scmp.lt.u32.totalorder %s1789_s13, %s2273_s1 }
  0x11   : > { %p2045_p11 = pnand %p1556_p9, %p2279_p1 }
  0x13   : > { %p1791_p13 = pneg %p2045_p11 }
  0x15   : > { %p1792_p0 = pnand %p1791_p13, %p1790_p12 }
  0x17   : > { %p1793_p3 = pneg %p1792_p0 }
  0x19   : > { %p1798_p7 = pnand %p1796_p5, %p1793_p3 }
  0x1b   : > { %1801 = shalt.err (!%p1798_p7)
}
  0x1c   : > { %s1802_s18 = scalar_lea.vmem %s2038_s7, 12288  ;;  %p1810_p2 = scmp.lt.s32.totalorder %s2038_s7, %s2038_s7 }
  0x1d   : > { %p1803_p9 = scmp.ne.s32.totalorder %s2038_s7, %s1802_s18  ;;  %p1811_p12 = scmp.lt.s32.totalorder %s1802_s18, %s1802_s18 }
  0x1f   : > { %p1805_p10 = pnand %p1803_p9, %p1791_p13  ;;  %p1812_p0 = por %p1811_p12, %p1810_p2 }
  0x21   : > { %p1806_p1 = pneg %p1805_p10 }
  0x23   : > { %p1813_p6 = pnand %p1812_p0, %p1806_p1 }
  0x25   : > { %1816 = shalt.err (!%p1813_p6)
}
  0x26   : > { %s1949_s19 = smov 128   ;;  %s1950_s20 = smov 8  }
  0x27   : > { %1559 = dma.hbm_to_vmem [thread:$0]  (!%p2045_p11), %s2273_s1, 12288, %s2038_s7, [#allocation6], %s1949_s19, %s1949_s19, %s1950_s20  }
  0x28   : > { %s1817_s12 = scalar_lea.hbm %s2277_s5, 1024 }
  0x29   : > { %p1818_p2 = scmp.ne.s32.totalorder %s2277_s5, %s1817_s12  ;;  %p1824_p10 = scmp.lt.u32.totalorder %s1817_s12, %s2277_s5 }
  0x2b   : > { %p1820_p1 = pnand %p1818_p2, %p1791_p13 }
  0x2d   : > { %p1821_p6 = pneg %p1820_p1 }
  0x2f   : > { %p1826_p3 = pnand %p1824_p10, %p1821_p6 }
  0x31   : > { %1829 = shalt.err (!%p1826_p3)
}
  0x32   : > { %s1830_s7 = scalar_lea.vmem %s2049_s10, 1024  ;;  %p1838_p12 = scmp.lt.s32.totalorder %s2049_s10, %s2049_s10 }
  0x33   : > { %p1831_p5 = scmp.ne.s32.totalorder %s2049_s10, %s1830_s7  ;;  %p1839_p0 = scmp.lt.s32.totalorder %s1830_s7, %s1830_s7 }
  0x35   : > { %p1833_p7 = pnand %p1831_p5, %p1791_p13  ;;  %p1840_p2 = por %p1839_p0, %p1838_p12 }
  0x37   : > { %p1834_p9 = pneg %p1833_p7 }
  0x39   : > { %p1841_p1 = pnand %p1840_p2, %p1834_p9 }
  0x3b   : > { %1844 = shalt.err (!%p1841_p1)
}
  0x3c   : > { %s1951_s17 = smov 256   ;;  %s1952_s18 = smov 16  }
  0x3d   : > { %1562 = dma.hbm_to_vmem [thread:$0]  (!%p2045_p11), %s2277_s5, 1024, %s2049_s10, [#allocation6], %s1951_s17, %s1951_s17, %s1952_s18  }
  0x3e   : > { %s2104_s26 = sadd.s32 1, %s1945_s24   ;;  %s30_s9 = sadd.s32 1, %s1941_s23 }
  0x3f   : > { %s27_s30 = ssub.s32 %s1945_s24, %s2104_s26  ;;  %p37_p6 = scmp.ne.s32.totalorder %s1941_s23, %s1937_s22 }
  0x40   : > { %p28_p13 = scmp.eq.s32.totalorder %s27_s30, 0  ;;  %p38_p10 = scmp.eq.s32.totalorder %s1945_s24, 0 }
  0x41   : > { %p2286_p5 = scmp.eq.s32.totalorder %s2015_s25, 1  ;;  %p1573_p9 = scmp.lt.s32.totalorder %s1945_s24, 2 }
  0x42   : > { %s2113_s11 = scalar_select %p28_p13, %s1941_s23, %s30_s9  }
  0x43   : > { %p39_p3 = por %p38_p10, %p37_p6  ;;  %p2117_p7 = por %p2286_p5, %p37_p6 }
  0x44   : > { %s233_s8 = sand.u32 1, %s1941_s23   ;;  %s1542_s10 = smul.u32 1536, %s1945_s24 }
  0x45   : > { %s2287_s12 = scalar_select %p2117_p7, 1, 0 }
  0x46   : > { %s1541_s13 = smul.u32 96, %s233_s8  ;;  %p2124_p11 = pnand %p1573_p9, %p39_p3 }
  0x47   : > { %s2131_s7 = scalar_lea.hbm %s2272_s0, %s1542_s10  ;;  %s2135_s19 = scalar_lea.sflag [#allocation3], %s233_s8 }
  0x48   : > { %s237_s17 = scalar_lea.vmem [#allocation2], %s1541_s13  ;;  %s1845_s20 = scalar_lea.hbm %s2131_s7, 1536 }
  0x49   : > { %s245_s18 = sshll.u32 %s237_s17, 4  ;;  %p1846_p12 = scmp.ne.s32.totalorder %s2131_s7, %s1845_s20  ;;  %s2133_s18 = int_to_ptr.vmem [resolvable:$true] %s245_s18 }
  0x4a   : > { %p1847_p0 = pneg %p2124_p11  ;;  %s1850_s10 = scalar_lea.hbm %s2272_s0, 3072 }
  0x4b   : > { %p1851_p13 = scmp.lt.u32.totalorder %s2131_s7, %s2272_s0  ;;  %p1852_p6 = scmp.lt.u32.totalorder %s1850_s10, %s1845_s20 }
  0x4c   : > { %p1848_p2 = pnand %p1847_p0, %p1846_p12  ;;  %p1854_p3 = scmp.lt.u32.totalorder %s1845_s20, %s2131_s7 }
  0x4d   : > { %p1853_p10 = por %p1852_p6, %p1851_p13 }
  0x4e   : > { %p1849_p1 = pneg %p1848_p2 }
  0x4f   : > { %p1855_p5 = por %p1854_p3, %p1853_p10 }
  0x51   : > { %p1856_p9 = pnand %p1855_p5, %p1849_p1 }
  0x53   : > { %1859 = shalt.err (!%p1856_p9)
}
  0x54   : > { %s1860_s8 = scalar_lea.vmem %s2133_s18, 1536  ;;  %s1953_s13 = smov [#allocation2]  }
  0x55   : > { %p1861_p12 = scmp.ne.s32.totalorder %s2133_s18, %s1860_s8  ;;  %s1865_s17 = sshll.u32 %s1953_s13, 4  ;;  %s1866_s17 = int_to_ptr.vmem [resolvable:$false] %s1865_s17 }
  0x56   : > { %s1867_s30 = scalar_lea.vmem %s1866_s17, 3072  ;;  %p1868_p4 = scmp.lt.s32.totalorder %s2133_s18, %s1866_s17 }
  0x57   : > { %p1863_p2 = pnand %p1861_p12, %p1847_p0  ;;  %p1869_p13 = scmp.lt.s32.totalorder %s1867_s30, %s1860_s8 }
  0x59   : > { %p1864_p7 = pneg %p1863_p2  ;;  %p1870_p6 = por %p1869_p13, %p1868_p4 }
  0x5b   : > { %p1871_p10 = pnand %p1870_p6, %p1864_p7 }
  0x5d   : > { %1874 = shalt.err (!%p1871_p10)
}
  0x5e   : > { %s1954_s20 = smov 384   ;;  %s1955_s9 = smov 24  }
  0x5f   : > { %1566 = dma.hbm_to_vmem [thread:$0]  (!%p2124_p11), %s2131_s7, 1536, %s2133_s18, %s2135_s19, %s1954_s20, %s1954_s20, %s1955_s9  }
  0x60   : > { %257 = sbr.rel (%p2034_p8) target bundleno = 792 (0x318), region = 44  ;;  %s2166_s10 = sand.u32 (!%p2034_p8), 1, %s1937_s22  }
  0x61   : > { %s1543_s15 = smul.u32 (!%p2034_p8), 96, %s2166_s10  ;;  %s260_s16 = scalar_lea.sflag (!%p2034_p8), [#allocation3], %s2166_s10 }
  0x62   : > { %p2289_p4 = scmp.ne.s32.totalorder (!%p2034_p8), %s2282_s27, 0 }
  0x63   : > { %s2170_s8 = scalar_lea.vmem (!%p2034_p8), [#allocation2], %s1543_s15 }
  0x67   : > { %1920 = dma.done.wait (%p2289_p4), %s260_s16, 1536  }
  0x68   : > { %1922 = vsyncadd (%p2289_p4), %s260_s16, 4294965760  ;;  %p2290_p7 = scmp.eq.s32.totalorder %s2015_s25, 0 }
  0x6a   : > { %1924 = dma.done.wait (%p2290_p7), [#allocation6], 13312   ;;  %p2291_p8 = pmov %p2290_p7 }
  0x6b   : > { %v1619_v0 = vld [vmem:[#allocation5 + $0x4] ss:$8 sps:$4 sm:$0xff]   ;;  %v1623_v2 = vld [vmem:[#allocation5] ss:$8 sps:$4 sm:$0xff]   ;;  %v1625_v4 = vld [vmem:[#allocation5 + $0x14] ss:$8 sps:$4 sm:$0xff]  }
  0x6c   : > { %1926 = vsyncadd (%p2291_p8), [#allocation6], 4294953984  ;;  %v1621_v1 = vld [vmem:[#allocation5 + $0x104] ss:$8 sps:$4 sm:$0xff]   ;;  %962 = vmatprep.subr.bf16.mxu1 %v1619_v0  ;;  %v1624_v3 = vld [vmem:[#allocation5 + $0x100] ss:$8 sps:$4 sm:$0xff]  }
  0x6d   : > { %1015 = vmatprep.subr.bf16.mxu0 %v1621_v1  ;;  %963 = vmatpush1.bf16.msra.mxu1 %v1623_v2  ;;  %v1627_v5 = vld [vmem:[#allocation5 + $0x114] ss:$8 sps:$4 sm:$0xff]   ;;  %v1629_v6 = vld [vmem:[#allocation5 + $0x10] ss:$8 sps:$4 sm:$0xff]   ;;  %v1631_v8 = vld [vmem:[#allocation5 + $0x24] ss:$8 sps:$4 sm:$0xff]  }
  0x6e   : > { %1016 = vmatpush1.bf16.msra.mxu0 %v1624_v3  ;;  %964 = vmatprep.subr.bf16.mxu1 %v1625_v4  ;;  %v1630_v7 = vld [vmem:[#allocation5 + $0x110] ss:$8 sps:$4 sm:$0xff]   ;;  %v1633_v9 = vld [vmem:[#allocation5 + $0x124] ss:$8 sps:$4 sm:$0xff]   ;;  %v1635_v10 = vld [vmem:[#allocation5 + $0x20] ss:$8 sps:$4 sm:$0xff]  }
  0x6f   : > { %1017 = vmatprep.subr.bf16.mxu0 %v1627_v5  ;;  %v1636_v11 = vld [vmem:[#allocation5 + $0x120] ss:$8 sps:$4 sm:$0xff]   ;;  %v1637_v12 = vld [vmem:[#allocation5 + $0x34] ss:$8 sps:$4 sm:$0xff]   ;;  %v1641_v14 = vld [vmem:[#allocation5 + $0x30] ss:$8 sps:$4 sm:$0xff]  }
  0x70   : > { %v1639_v13 = vld [vmem:[#allocation5 + $0x134] ss:$8 sps:$4 sm:$0xff]   ;;  %v1642_v15 = vld [vmem:[#allocation5 + $0x130] ss:$8 sps:$4 sm:$0xff]   ;;  %v1643_v16 = vld [vmem:[#allocation5 + $0x44] ss:$8 sps:$4 sm:$0xff]  }
  0x71   : > { %965 = vmatpush1.bf16.msra.mxu1 %v1629_v6  ;;  %v1645_v17 = vld [vmem:[#allocation5 + $0x144] ss:$8 sps:$4 sm:$0xff]   ;;  %v1647_v18 = vld [vmem:[#allocation5 + $0x40] ss:$8 sps:$4 sm:$0xff]   ;;  %v1649_v20 = vld [vmem:[#allocation5 + $0x54] ss:$8 sps:$4 sm:$0xff]  }
  0x72   : > { %1018 = vmatpush1.bf16.msra.mxu0 %v1630_v7  ;;  %966 = vmatprep.subr.bf16.mxu1 %v1631_v8  ;;  %v1648_v19 = vld [vmem:[#allocation5 + $0x140] ss:$8 sps:$4 sm:$0xff]   ;;  %v1651_v21 = vld [vmem:[#allocation5 + $0x154] ss:$8 sps:$4 sm:$0xff]   ;;  %v1653_v22 = vld [vmem:[#allocation5 + $0x50] ss:$8 sps:$4 sm:$0xff]  }
  0x73   : > { %1019 = vmatprep.subr.bf16.mxu0 %v1633_v9  ;;  %v1654_v23 = vld [vmem:[#allocation5 + $0x150] ss:$8 sps:$4 sm:$0xff]   ;;  %v1655_v24 = vld [vmem:[#allocation5 + $0x64] ss:$8 sps:$4 sm:$0xff]   ;;  %v1659_v26 = vld [vmem:[#allocation5 + $0x60] ss:$8 sps:$4 sm:$0xff]  }
  0x74   : > { %v1657_v25 = vld [vmem:[#allocation5 + $0x164] ss:$8 sps:$4 sm:$0xff]   ;;  %v1660_v27 = vld [vmem:[#allocation5 + $0x160] ss:$8 sps:$4 sm:$0xff]   ;;  %v1661_v28 = vld [vmem:[#allocation5 + $0x74] ss:$8 sps:$4 sm:$0xff]  }
  0x75   : > { %967 = vmatpush1.bf16.msra.mxu1 %v1635_v10  ;;  %v1663_v29 = vld [vmem:[#allocation5 + $0x174] ss:$8 sps:$4 sm:$0xff]   ;;  %v1665_v30 = vld [vmem:[#allocation5 + $0x70] ss:$8 sps:$4 sm:$0xff]   ;;  %v1667_v32 = vld [vmem:[#allocation5 + $0x84] ss:$8 sps:$4 sm:$0xff]  }
  0x76   : > { %1020 = vmatpush1.bf16.msra.mxu0 %v1636_v11  ;;  %968 = vmatprep.subr.bf16.mxu1 %v1637_v12  ;;  %v1666_v31 = vld [vmem:[#allocation5 + $0x170] ss:$8 sps:$4 sm:$0xff]   ;;  %v1669_v33 = vld [vmem:[#allocation5 + $0x184] ss:$8 sps:$4 sm:$0xff]   ;;  %v1671_v34 = vld [vmem:[#allocation5 + $0x80] ss:$8 sps:$4 sm:$0xff]  }
  0x77   : > { %1021 = vmatprep.subr.bf16.mxu0 %v1639_v13  ;;  %v1672_v35 = vld [vmem:[#allocation5 + $0x180] ss:$8 sps:$4 sm:$0xff]   ;;  %v1673_v36 = vld [vmem:[#allocation5 + $0x94] ss:$8 sps:$4 sm:$0xff]   ;;  %v1677_v38 = vld [vmem:[#allocation5 + $0x90] ss:$8 sps:$4 sm:$0xff]  }
  0x78   : > { %v1675_v37 = vld [vmem:[#allocation5 + $0x194] ss:$8 sps:$4 sm:$0xff]   ;;  %v1678_v39 = vld [vmem:[#allocation5 + $0x190] ss:$8 sps:$4 sm:$0xff]   ;;  %v1679_v40 = vld [vmem:[#allocation5 + $0xa4] ss:$8 sps:$4 sm:$0xff]  }
  0x79   : > { %969 = vmatpush1.bf16.msra.mxu1 %v1641_v14  ;;  %v1681_v41 = vld [vmem:[#allocation5 + $0x1a4] ss:$8 sps:$4 sm:$0xff]   ;;  %v1683_v42 = vld [vmem:[#allocation5 + $0xa0] ss:$8 sps:$4 sm:$0xff]   ;;  %v1685_v44 = vld [vmem:[#allocation5 + $0xb4] ss:$8 sps:$4 sm:$0xff]  }
  0x7a   : > { %1022 = vmatpush1.bf16.msra.mxu0 %v1642_v15  ;;  %970 = vmatprep.subr.bf16.mxu1 %v1643_v16  ;;  %v1684_v43 = vld [vmem:[#allocation5 + $0x1a0] ss:$8 sps:$4 sm:$0xff]   ;;  %v1687_v45 = vld [vmem:[#allocation5 + $0x1b4] ss:$8 sps:$4 sm:$0xff]   ;;  %v1689_v46 = vld [vmem:[#allocation5 + $0xb0] ss:$8 sps:$4 sm:$0xff]  }
  0x7b   : > { %1023 = vmatprep.subr.bf16.mxu0 %v1645_v17  ;;  %v1690_v47 = vld [vmem:[#allocation5 + $0x1b0] ss:$8 sps:$4 sm:$0xff]   ;;  %v1691_v48 = vld [vmem:[#allocation5 + $0xc4] ss:$8 sps:$4 sm:$0xff]   ;;  %v1695_v52 = vld [vmem:[#allocation5 + $0xc0] ss:$8 sps:$4 sm:$0xff]  }
  0x7c   : > { %v1717_v49 = vld [vmem:[%s2170_s8 + $0x4] ss:$24 sps:$4 sm:$0xff]   ;;  %v1696_v53 = vld [vmem:[#allocation5 + $0x1c0] ss:$8 sps:$4 sm:$0xff]   ;;  %v1701_v56 = vld [vmem:[#allocation5 + $0xd0] ss:$8 sps:$4 sm:$0xff]  }
  0x7d   : > { %971 = vmatpush1.bf16.msra.mxu1 %v1647_v18  ;;  %v1693_v50 = vld [vmem:[#allocation5 + $0x1c4] ss:$8 sps:$4 sm:$0xff]   ;;  %994 = vmatprep.mubr.bf16.mxu1 %v1717_v49  ;;  %v1697_v54 = vld [vmem:[#allocation5 + $0xd4] ss:$8 sps:$4 sm:$0xff]   ;;  %v1702_v57 = vld [vmem:[#allocation5 + $0x1d0] ss:$8 sps:$4 sm:$0xff]  }
  0x7e   : > { %1024 = vmatpush1.bf16.msra.mxu0 %v1648_v19  ;;  %972 = vmatprep.subr.bf16.mxu1 %v1649_v20  ;;  %v1720_v51 = vld [vmem:[%s2170_s8 + $0xc] ss:$24 sps:$4 sm:$0xff]   ;;  %v1699_v55 = vld [vmem:[#allocation5 + $0x1d4] ss:$8 sps:$4 sm:$0xff]   ;;  %v1707_v60 = vld [vmem:[#allocation5 + $0xe0] ss:$8 sps:$4 sm:$0xff]  }
  0x7f   : > { %1025 = vmatprep.subr.bf16.mxu0 %v1651_v21  ;;  %1047 = vmatprep.mubr.bf16.mxu0 %v1720_v51  ;;  %v1703_v58 = vld [vmem:[#allocation5 + $0xe4] ss:$8 sps:$4 sm:$0xff]   ;;  %v1708_v61 = vld [vmem:[#allocation5 + $0x1e0] ss:$8 sps:$4 sm:$0xff]   ;;  %v1709_v62 = vld [vmem:[#allocation5 + $0xf4] ss:$8 sps:$4 sm:$0xff]  }
  0x80   : > { %v1705_v59 = vld [vmem:[#allocation5 + $0x1e4] ss:$8 sps:$4 sm:$0xff]   ;;  %v1711_v63 = vld [vmem:[#allocation5 + $0x1f4] ss:$8 sps:$4 sm:$0xff]   ;;  %v1713_v0 = vld [vmem:[#allocation5 + $0xf0] ss:$8 sps:$4 sm:$0xff]  }
  0x81   : > { %973 = vmatpush1.bf16.msra.mxu1 %v1653_v22  ;;  %v1714_v1 = vld [vmem:[#allocation5 + $0x1f0] ss:$8 sps:$4 sm:$0xff]   ;;  %v1723_v2 = vld [vmem:[#allocation5 + $0x204] ss:$8 sps:$4 sm:$0xff]   ;;  %v1718_v4 = vld [vmem:[%s2170_s8 + $0x8] ss:$24 sps:$4 sm:$0xff]  }
  0x82   : > { %1026 = vmatpush1.bf16.msra.mxu0 %v1654_v23  ;;  %974 = vmatprep.subr.bf16.mxu1 %v1655_v24  ;;  %v1715_v3 = vld [vmem:[%s2170_s8] ss:$24 sps:$4 sm:$0xff]   ;;  %v1726_v6 = vld [vmem:[#allocation5 + $0x214] ss:$8 sps:$4 sm:$0xff]   ;;  %v1729_v10 = vld [vmem:[#allocation5 + $0x224] ss:$8 sps:$4 sm:$0xff]  }
  0x83   : > { %1027 = vmatprep.subr.bf16.mxu0 %v1657_v25  ;;  %v1721_v5 = vld [vmem:[#allocation5 + $0x200] ss:$8 sps:$4 sm:$0xff]   ;;  %v1760_v7 = vld [vmem:[%s2170_s8 + $0x34] ss:$24 sps:$4 sm:$0xff]   ;;  %v1724_v9 = vld [vmem:[#allocation5 + $0x210] ss:$8 sps:$4 sm:$0xff]  }
  0x84   : > { %v1763_v8 = vld [vmem:[%s2170_s8 + $0x3c] ss:$24 sps:$4 sm:$0xff]   ;;  %v1762_v11 = vld [vmem:[%s2170_s8 + $0x30] ss:$24 sps:$4 sm:$0xff]   ;;  %v1735_v18 = vld [vmem:[#allocation5 + $0x244] ss:$8 sps:$4 sm:$0xff]  }
  0x85   : > { %975 = vmatpush1.bf16.msra.mxu1 %v1659_v26  ;;  %v1768_v12 = vld [vmem:[%s2170_s8 + $0x38] ss:$24 sps:$4 sm:$0xff]   ;;  %v1727_v13 = vld [vmem:[#allocation5 + $0x220] ss:$8 sps:$4 sm:$0xff]   ;;  %v1732_v14 = vld [vmem:[#allocation5 + $0x234] ss:$8 sps:$4 sm:$0xff]  }
  0x86   : > { %1028 = vmatpush1.bf16.msra.mxu0 %v1660_v27  ;;  %976 = vmatprep.subr.bf16.mxu1 %v1661_v28  ;;  %v1777_v15 = vld [vmem:[%s2170_s8 + $0x14] ss:$24 sps:$4 sm:$0xff]   ;;  %v1780_v16 = vld [vmem:[%s2170_s8 + $0x44] ss:$24 sps:$4 sm:$0xff]   ;;  %v1730_v17 = vld [vmem:[#allocation5 + $0x230] ss:$8 sps:$4 sm:$0xff]  }
  0x87   : > { %1029 = vmatprep.subr.bf16.mxu0 %v1663_v29  ;;  %v1733_v19 = vld [vmem:[#allocation5 + $0x240] ss:$8 sps:$4 sm:$0xff]   ;;  %v1738_v20 = vld [vmem:[#allocation5 + $0x254] ss:$8 sps:$4 sm:$0xff]   ;;  %v1736_v21 = vld [vmem:[#allocation5 + $0x250] ss:$8 sps:$4 sm:$0xff]  }
  0x88   : > { %v1741_v22 = vld [vmem:[#allocation5 + $0x264] ss:$8 sps:$4 sm:$0xff]   ;;  %v1739_v23 = vld [vmem:[#allocation5 + $0x260] ss:$8 sps:$4 sm:$0xff]   ;;  %v1744_v24 = vld [vmem:[#allocation5 + $0x274] ss:$8 sps:$4 sm:$0xff]  }
  0x89   : > { %977 = vmatpush1.bf16.msra.mxu1 %v1665_v30  ;;  %v1742_v25 = vld [vmem:[#allocation5 + $0x270] ss:$8 sps:$4 sm:$0xff]   ;;  %v1747_v26 = vld [vmem:[#allocation5 + $0x284] ss:$8 sps:$4 sm:$0xff]   ;;  %v1745_v27 = vld [vmem:[#allocation5 + $0x280] ss:$8 sps:$4 sm:$0xff]  }
  0x8a   : > { %1030 = vmatpush1.bf16.msra.mxu0 %v1666_v31  ;;  %978 = vmatprep.subr.bf16.mxu1 %v1667_v32  ;;  %v1750_v28 = vld [vmem:[#allocation5 + $0x294] ss:$8 sps:$4 sm:$0xff]   ;;  %v1748_v29 = vld [vmem:[#allocation5 + $0x290] ss:$8 sps:$4 sm:$0xff]   ;;  %v1753_v30 = vld [vmem:[#allocation5 + $0x2a4] ss:$8 sps:$4 sm:$0xff]  }
  0x8b   : > { %1031 = vmatprep.subr.bf16.mxu0 %v1669_v33  ;;  %v1751_v31 = vld [vmem:[#allocation5 + $0x2a0] ss:$8 sps:$4 sm:$0xff]   ;;  %v1756_v32 = vld [vmem:[#allocation5 + $0x2b4] ss:$8 sps:$4 sm:$0xff]   ;;  %v1754_v33 = vld [vmem:[#allocation5 + $0x2b0] ss:$8 sps:$4 sm:$0xff]  }
  0x8c   : > { %v410_v51 = vld [vmem:[%s2274_s2] sm:$0x3]  ;;  %s1368_s13 = sshll.u32 %s2166_s10, 6  ;;  %s1484_s30 = sshll.u32 %s2015_s25, 10 }
  0x8d   : > { %979 = vmatpush1.bf16.msra.mxu1 %v1671_v34  ;;  %v1759_v34 = vld [vmem:[#allocation5 + $0x2c4] ss:$8 sps:$4 sm:$0xff]   ;;  %s299_s17 = scalar_lea.vmem [#allocation8], %s1368_s13  ;;  %s2226_s16 = scalar_lea.hbm %s2278_s6, %s1484_s30 }
  0x8e   : > { %1032 = vmatpush1.bf16.msra.mxu0 %v1672_v35  ;;  %980 = vmatprep.subr.bf16.mxu1 %v1673_v36  ;;  %v1757_v35 = vld [vmem:[#allocation5 + $0x2c0] ss:$8 sps:$4 sm:$0xff]   ;;  %v1767_v36 = vld [vmem:[#allocation5 + $0x2d4] ss:$8 sps:$4 sm:$0xff]   ;;  %s1265_s20 = sshll.u32 %s299_s17, 4  ;;  %s1251_s25 = scalar_lea.sflag [#allocation4], %s2166_s10  ;;  %s2228_s20 = int_to_ptr.vmem [resolvable:$true] %s1265_s20 }
  0x8f   : > { %1033 = vmatprep.subr.bf16.mxu0 %v1675_v37  ;;  %v1765_v37 = vld [vmem:[#allocation5 + $0x2d0] ss:$8 sps:$4 sm:$0xff]   ;;  %p2292_p0 = scmp.ne.s32.totalorder %s2287_s12, 0  ;;  %s1956_s27 = smov [#allocation8]  }
  0x90   : > { %s1879_s29 = sshll.u32 %s1956_s27, 4  ;;  %s1880_s29 = int_to_ptr.vmem [resolvable:$false] %s1879_s29 }
  0x91   : > { %981 = vmatpush1.bf16.msra.mxu1 %v1677_v38  ;;  %v1771_v38 = vld [vmem:[#allocation5 + $0x2e4] ss:$8 sps:$4 sm:$0xff]   ;;  %s1881_s14 = scalar_lea.vmem %s1880_s29, 2048  ;;  %p1882_p5 = scmp.lt.s32.totalorder %s2228_s20, %s1880_s29 }
  0x92   : > { %1034 = vmatpush1.bf16.msra.mxu0 %v1678_v39  ;;  %982 = vmatprep.subr.bf16.mxu1 %v1679_v40  ;;  %v1769_v39 = vld [vmem:[#allocation5 + $0x2e0] ss:$8 sps:$4 sm:$0xff]   ;;  %v1774_v40 = vld [vmem:[#allocation5 + $0x2f4] ss:$8 sps:$4 sm:$0xff]  }
  0x93   : > { %1035 = vmatprep.subr.bf16.mxu0 %v1681_v41  ;;  %v1772_v41 = vld [vmem:[#allocation5 + $0x2f0] ss:$8 sps:$4 sm:$0xff]  }
  0x95   : > { %983 = vmatpush1.bf16.msra.mxu1 %v1683_v42  ;;  %v1775_v42 = vld [vmem:[%s2170_s8 + $0x10] ss:$24 sps:$4 sm:$0xff]  }
  0x96   : > { %1036 = vmatpush1.bf16.msra.mxu0 %v1684_v43  ;;  %984 = vmatprep.subr.bf16.mxu1 %v1685_v44  ;;  %v1778_v43 = vld [vmem:[%s2170_s8 + $0x40] ss:$24 sps:$4 sm:$0xff]   ;;  %v412_v44 = vlaneseq  ;;  %s1875_s8 = scalar_lea.vmem %s2228_s20, 1024 }
  0x97   : > { %1037 = vmatprep.subr.bf16.mxu0 %v1687_v45  ;;  %p1876_p11 = scmp.ne.s32.totalorder %s2228_s20, %s1875_s8  ;;  %p1883_p9 = scmp.lt.s32.totalorder %s1881_s14, %s1875_s8 }
  0x98   : > { %v413_v45 = vshrl.u32 %v412_v44, 7 }
  0x99   : > { %985 = vmatpush1.bf16.msra.mxu1 %v1689_v46  ;;  %p1877_p1 = pnand %p1876_p11, %p2292_p0  ;;  %p1884_p12 = por %p1883_p9, %p1882_p5 }
  0x9a   : > { %1038 = vmatpush1.bf16.msra.mxu0 %v1690_v47  ;;  %986 = vmatprep.subr.bf16.mxu1 %v1691_v48  ;;  %v2192_v49 = vsub.s32 0, %v413_v45 }
  0x9b   : > { %1039 = vmatprep.subr.bf16.mxu0 %v1693_v50  ;;  %p1878_p3 = pneg %p1877_p1 }
  0x9d   : > { %987 = vmatpush1.bf16.msra.mxu1 %v1695_v52  ;;  %v2197_v52 = vsub.s32 1, %v413_v45  ;;  %p1885_p2 = pnand %p1884_p12, %p1878_p3 }
  0x9e   : > { %1040 = vmatpush1.bf16.msra.mxu0 %v1696_v53  ;;  %988 = vmatprep.subr.bf16.mxu1 %v1697_v54  ;;  %v415_v53 = vrot.slane %v410_v51, %v2192_v49 }
  0x9f   : > { %1041 = vmatprep.subr.bf16.mxu0 %v1699_v55  ;;  %v419_v54 = vrot.slane %v410_v51, %v2197_v52 }
  0xa1   : > { %989 = vmatpush1.bf16.msra.mxu1 %v1701_v56 }
  0xa2   : > { %1042 = vmatpush1.bf16.msra.mxu0 %v1702_v57  ;;  %990 = vmatprep.subr.bf16.mxu1 %v1703_v58 }
  0xa3   : > { %1043 = vmatprep.subr.bf16.mxu0 %v1705_v59 }
  0xa5   : > { %991 = vmatpush1.bf16.msra.mxu1 %v1707_v60 }
  0xa6   : > { %1044 = vmatpush1.bf16.msra.mxu0 %v1708_v61  ;;  %992 = vmatprep.subr.bf16.mxu1 %v1709_v62 }
  0xa7   : > { %1045 = vmatprep.subr.bf16.mxu0 %v1711_v63 }
  0xa9   : > { %993 = vmatpush1.bf16.msra.mxu1 %v1713_v0 }
  0xaa   : > { %1046 = vmatpush1.bf16.msra.mxu0 %v1714_v1  ;;  %1485 = vmatprep.subr.bf16.mxu1 %v1723_v2 }
  0xab   : > { %1068 = vmatprep.subr.bf16.mxu0 %v1723_v2 }
  0xac   : > { %995 = vmatmul.mubr.bf16.vlgmr.msra.gmra.mrb[0].mxu1 %v1715_v3 }
  0xad   : > { %1048 = vmatmul.mubr.bf16.vlgmr.msra.gmra.mrb[0].mxu0 %v1718_v4  ;;  %1501 = vmatpush1.bf16.msra.mxu1 %v1721_v5 }
  0xae   : > { %1069 = vmatpush1.bf16.msra.mxu0 %v1721_v5  ;;  %1486 = vmatprep.subr.bf16.mxu1 %v1726_v6 }
  0xaf   : > { %1070 = vmatprep.subr.bf16.mxu0 %v1726_v6  ;;  %1004 = vmatprep.mubr.bf16.mxu1 %v1760_v7 }
  0xb0   : > { %1057 = vmatprep.mubr.bf16.mxu0 %v1763_v8 }
  0xb1   : > { %1502 = vmatpush1.bf16.msra.mxu1 %v1724_v9 }
  0xb2   : > { %1071 = vmatpush1.bf16.msra.mxu0 %v1724_v9  ;;  %1487 = vmatprep.subr.bf16.mxu1 %v1729_v10 }
  0xb3   : > { %1072 = vmatprep.subr.bf16.mxu0 %v1729_v10 }
  0xb4   : > { %1005 = vmatmul.mubr.bf16.gmra.mrb[4].mxu1 %v1762_v11 }
  0xb5   : > { %1058 = vmatmul.mubr.bf16.gmra.mrb[4].mxu0 %v1768_v12  ;;  %1503 = vmatpush1.bf16.msra.mxu1 %v1727_v13 }
  0xb6   : > { %1073 = vmatpush1.bf16.msra.mxu0 %v1727_v13  ;;  %1488 = vmatprep.subr.bf16.mxu1 %v1732_v14 }
  0xb7   : > { %1074 = vmatprep.subr.bf16.mxu0 %v1732_v14  ;;  %1100 = vmatprep.mubr.bf16.mxu0 %v1777_v15 }
  0xb8   : > { %1110 = vmatprep.mubr.bf16.mxu1 %v1780_v16 }
  0xb9   : > { %1504 = vmatpush1.bf16.msra.mxu1 %v1730_v17 }
  0xba   : > { %1075 = vmatpush1.bf16.msra.mxu0 %v1730_v17  ;;  %1489 = vmatprep.subr.bf16.mxu1 %v1735_v18 }
  0xbb   : > { %1076 = vmatprep.subr.bf16.mxu0 %v1735_v18 }
  0xbd   : > { %1505 = vmatpush1.bf16.msra.mxu1 %v1733_v19 }
  0xbe   : > { %1077 = vmatpush1.bf16.msra.mxu0 %v1733_v19  ;;  %1490 = vmatprep.subr.bf16.mxu1 %v1738_v20 }
  0xbf   : > { %1078 = vmatprep.subr.bf16.mxu0 %v1738_v20 }
  0xc1   : > { %1506 = vmatpush1.bf16.msra.mxu1 %v1736_v21 }
  0xc2   : > { %1079 = vmatpush1.bf16.msra.mxu0 %v1736_v21  ;;  %1491 = vmatprep.subr.bf16.mxu1 %v1741_v22 }
  0xc3   : > { %1080 = vmatprep.subr.bf16.mxu0 %v1741_v22 }
  0xc5   : > { %1507 = vmatpush1.bf16.msra.mxu1 %v1739_v23 }
  0xc6   : > { %1081 = vmatpush1.bf16.msra.mxu0 %v1739_v23  ;;  %1492 = vmatprep.subr.bf16.mxu1 %v1744_v24 }
  0xc7   : > { %1082 = vmatprep.subr.bf16.mxu0 %v1744_v24 }
  0xc9   : > { %1508 = vmatpush1.bf16.msra.mxu1 %v1742_v25 }
  0xca   : > { %1083 = vmatpush1.bf16.msra.mxu0 %v1742_v25  ;;  %1493 = vmatprep.subr.bf16.mxu1 %v1747_v26 }
  0xcb   : > { %1084 = vmatprep.subr.bf16.mxu0 %v1747_v26 }
  0xcd   : > { %1509 = vmatpush1.bf16.msra.mxu1 %v1745_v27 }
  0xce   : > { %1085 = vmatpush1.bf16.msra.mxu0 %v1745_v27  ;;  %1494 = vmatprep.subr.bf16.mxu1 %v1750_v28 }
  0xcf   : > { %1086 = vmatprep.subr.bf16.mxu0 %v1750_v28 }
  0xd1   : > { %1510 = vmatpush1.bf16.msra.mxu1 %v1748_v29 }
  0xd2   : > { %1087 = vmatpush1.bf16.msra.mxu0 %v1748_v29  ;;  %1495 = vmatprep.subr.bf16.mxu1 %v1753_v30 }
  0xd3   : > { %1088 = vmatprep.subr.bf16.mxu0 %v1753_v30 }
  0xd5   : > { %1511 = vmatpush1.bf16.msra.mxu1 %v1751_v31 }
  0xd6   : > { %1089 = vmatpush1.bf16.msra.mxu0 %v1751_v31  ;;  %1496 = vmatprep.subr.bf16.mxu1 %v1756_v32 }
  0xd7   : > { %1090 = vmatprep.subr.bf16.mxu0 %v1756_v32 }
  0xd9   : > { %1512 = vmatpush1.bf16.msra.mxu1 %v1754_v33 }
  0xda   : > { %1091 = vmatpush1.bf16.msra.mxu0 %v1754_v33  ;;  %1497 = vmatprep.subr.bf16.mxu1 %v1759_v34 }
  0xdb   : > { %1092 = vmatprep.subr.bf16.mxu0 %v1759_v34 }
  0xdd   : > { %1513 = vmatpush1.bf16.msra.mxu1 %v1757_v35 }
  0xde   : > { %1093 = vmatpush1.bf16.msra.mxu0 %v1757_v35  ;;  %1498 = vmatprep.subr.bf16.mxu1 %v1767_v36 }
  0xdf   : > { %1094 = vmatprep.subr.bf16.mxu0 %v1767_v36 }
  0xe1   : > { %1514 = vmatpush1.bf16.msra.mxu1 %v1765_v37 }
  0xe2   : > { %1095 = vmatpush1.bf16.msra.mxu0 %v1765_v37  ;;  %1499 = vmatprep.subr.bf16.mxu1 %v1771_v38 }
  0xe3   : > { %1096 = vmatprep.subr.bf16.mxu0 %v1771_v38 }
  0xe5   : > { %1515 = vmatpush1.bf16.msra.mxu1 %v1769_v39 }
  0xe6   : > { %1097 = vmatpush1.bf16.msra.mxu0 %v1769_v39  ;;  %1500 = vmatprep.subr.bf16.mxu1 %v1774_v40 }
  0xe7   : > { %1098 = vmatprep.subr.bf16.mxu0 %v1774_v40 }
  0xe9   : > { %1516 = vmatpush1.bf16.msra.mxu1 %v1772_v41 }
  0xea   : > { %1099 = vmatpush1.bf16.msra.mxu0 %v1772_v41 }
  0xec   : > { %1111 = vmatmul.mubr.bf16.vlgmr.msra.gmra.mrb[8].mxu1 %v1778_v43 }
  0xed   : > { %1101 = vmatmul.mubr.bf16.vlgmr.msra.gmra.mrb[0].mxu0 %v1775_v42 }
 0x17f   : > { %v996_v46 = vpop.f32.mrb[0].mxu1 }
 0x180   : > { %v998_v47 = vpop.f32.mrb[1].mxu1  ;;  %v997_v7 = vadd.f32 %v996_v46, %v415_v53 }
 0x181   : > { %v1000_v48 = vpop.f32.mrb[2].mxu1  ;;  %v999_v8 = vadd.f32 %v998_v47, %v419_v54 }
 0x182   : > { %v1002_v50 = vpop.f32.mrb[3].mxu1  ;;  %v1001_v11 = vadd.f32 %v1000_v48, %v415_v53 }
 0x183   : > { %v1003_v16 = vadd.f32 %v1002_v50, %v419_v54 }
 0x187   : > { %v1006_v55 = vpop.f32.mrb[4].mxu1 }
 0x188   : > { %v1059_v56 = vpop.f32.mrb[4].mxu0  ;;  %v1007_v57 = vadd.f32 %v1006_v55, %v415_v53  ;;  %v1008_v58 = vpop.f32.mrb[5].mxu1 }
 0x189   : > { %v1061_v59 = vpop.f32.mrb[5].mxu0  ;;  %v1009_v60 = vadd.f32 %v1008_v58, %v419_v54  ;;  %v1010_v61 = vpop.f32.mrb[6].mxu1 }
 0x18a   : > { %v1063_v62 = vpop.f32.mrb[6].mxu0  ;;  %v1011_v63 = vadd.f32 %v1010_v61, %v415_v53  ;;  %v1060_v0 = vadd.f32 %v1059_v56, %v1007_v57  ;;  %v1012_v1 = vpop.f32.mrb[7].mxu1 }
 0x18b   : > { %v1065_v2 = vpop.f32.mrb[7].mxu0  ;;  %v1013_v3 = vadd.f32 %v1012_v1, %v419_v54  ;;  %v1062_v4 = vadd.f32 %v1061_v59, %v1009_v60 }
 0x18c   : > { %v1064_v5 = vadd.f32 %v1063_v62, %v1011_v63 }
 0x18d   : > { %v1066_v6 = vadd.f32 %v1065_v2, %v1013_v3 }
 0x1bf   : > { %v1112_v10 = vpop.f32.mrb[8].mxu1 }
 0x1c0   : > { %v1102_v9 = vpop.f32.mrb[0].mxu0  ;;  %v1113_v13 = vadd.f32 %v1112_v10, %v1060_v0  ;;  %v1114_v15 = vpop.f32.mrb[9].mxu1  ;;  %v1206_v10 = vld [vmem:[%s2276_s4] sm:$0x3] }
 0x1c1   : > { %v1518_v12 = vadd.f32 %v1102_v9, %v997_v7  ;;  %v1104_v14 = vpop.f32.mrb[1].mxu0  ;;  %v1115_v18 = vadd.f32 %v1114_v15, %v1062_v4  ;;  %v1116_v20 = vpop.f32.mrb[10].mxu1  ;;  %v1186_v9 = vld [vmem:[%s2275_s3] sm:$0x3]  ;;  %v1215_v15 = vrot.slane %v1206_v10, %v2197_v52 }
 0x1c2   : > { %v1520_v17 = vadd.f32 %v1104_v14, %v999_v8  ;;  %v1106_v19 = vpop.f32.mrb[2].mxu0  ;;  %v1117_v22 = vadd.f32 %v1116_v20, %v1064_v5  ;;  %v1118_v24 = vpop.f32.mrb[11].mxu1  ;;  %v1211_v14 = vrot.slane %v1206_v10, %v2192_v49 }
 0x1c3   : > { %v1522_v21 = vadd.f32 %v1106_v19, %v1001_v11  ;;  %v1108_v23 = vpop.f32.mrb[3].mxu0  ;;  %v1119_v26 = vadd.f32 %v1118_v24, %v1066_v6  ;;  %v1127_v27 = vadd.f32 %v1115_v18, %v1113_v13  ;;  %v1191_v11 = vrot.slane %v1186_v9, %v2192_v49 }
 0x1c4   : > { %v1524_v25 = vadd.f32 %v1108_v23, %v1003_v16  ;;  %v1121_v28 = vadd.f32 %v1520_v17, %v1518_v12  ;;  %v1227_v23 = vld [vmem:[#allocation7 + $0x8] sm:$0xff] }
 0x1c5   : > { %1128 = vadd.xlane.f32.xlu1 %v1127_v27  ;;  %v1130_v29 = vadd.f32 %v1119_v26, %v1117_v22 }
 0x1c6   : > { %1122 = vadd.xlane.f32.xlu0 %v1121_v28  ;;  %v1124_v30 = vadd.f32 %v1524_v25, %v1522_v21 }
 0x1c9   : > { %1131 = vadd.xlane.f32.xlu1 %v1130_v29 }
 0x1ca   : > { %1125 = vadd.xlane.f32.xlu0 %v1124_v30 }
 0x252   : > { %v1129_v31 = vpop.xlane.xlu1 %1128 }
 0x253   : > { %v1123_v32 = vpop.xlane.xlu0 %1122  ;;  %v1136_v33 = vmul.f32 0.00390625, %v1129_v31 }
 0x254   : > { %v1134_v34 = vmul.f32 0.00390625, %v1123_v32 }
 0x255   : > { %v1142_v37 = vsub.f32 %v1113_v13, %v1136_v33  ;;  %v1143_v38 = vsub.f32 %v1115_v18, %v1136_v33  ;;  %v1228_v33 = vld [vmem:[#allocation7 + $0x10] sm:$0xff] }
 0x256   : > { %v1138_v35 = vsub.f32 %v1518_v12, %v1134_v34  ;;  %v1139_v36 = vsub.f32 %v1520_v17, %v1134_v34  ;;  %v1132_v39 = vpop.xlane.xlu1 %1131  ;;  %v1195_v12 = vrot.slane %v1186_v9, %v2197_v52  ;;  %v1229_v34 = vld [vmem:[#allocation7 + $0x18] sm:$0xff] }
 0x257   : > { %v1126_v40 = vpop.xlane.xlu0 %1125  ;;  %v1137_v41 = vmul.f32 0.00390625, %v1132_v39  ;;  %v1150_v51 = vmul.f32 %v1142_v37, %v1142_v37  ;;  %v1151_v53 = vmul.f32 %v1143_v38, %v1143_v38 }
 0x258   : > { %v1135_v42 = vmul.f32 0.00390625, %v1126_v40  ;;  %v1146_v43 = vmul.f32 %v1138_v35, %v1138_v35  ;;  %v1147_v44 = vmul.f32 %v1139_v36, %v1139_v36 }
 0x259   : > { %v2201_v45 = vsub.f32 %v1117_v22, %v1137_v41  ;;  %v2203_v46 = vsub.f32 %v1119_v26, %v1137_v41  ;;  %v1160_v59 = vadd.f32 %v1151_v53, %v1150_v51  ;;  %v1226_v22 = vld [vmem:[#allocation7] sm:$0xff] }
 0x25a   : > { %v1140_v47 = vsub.f32 %v1522_v21, %v1135_v42  ;;  %v1141_v48 = vsub.f32 %v1524_v25, %v1135_v42  ;;  %v1154_v50 = vadd.f32 %v1147_v44, %v1146_v43  ;;  %v1230_v41 = vld [vmem:[#allocation7 + $0x20] sm:$0xff]  ;;  %v1231_v42 = vld [vmem:[#allocation7 + $0x28] sm:$0xff] }
 0x25b   : > { %v1152_v57 = vmul.f32 %v2201_v45, %v2201_v45  ;;  %v1153_v58 = vmul.f32 %v2203_v46, %v2203_v46 }
 0x25c   : > { %v1148_v54 = vmul.f32 %v1140_v47, %v1140_v47  ;;  %v1149_v55 = vmul.f32 %v1141_v48, %v1141_v48  ;;  %1155 = vadd.xlane.f32.xlu0 %v1154_v50 }
 0x25d   : > { %v1163_v60 = vadd.f32 %v1153_v58, %v1152_v57 }
 0x25e   : > { %v1157_v56 = vadd.f32 %v1149_v55, %v1148_v54  ;;  %v1232_v55 = vld [vmem:[#allocation7 + $0x30] sm:$0xff] }
 0x260   : > { %1158 = vadd.xlane.f32.xlu1 %v1157_v56  ;;  %1161 = vadd.xlane.f32.xlu0 %v1160_v59  ;;  %v1233_v56 = vld [vmem:[#allocation7 + $0x38] sm:$0xff] }
 0x264   : > { %1164 = vadd.xlane.f32.xlu1 %v1163_v60 }
 0x2e9   : > { %v1156_v61 = vpop.xlane.xlu0 %1155 }
 0x2ea   : > { %v1166_v62 = vmul.f32 0.00390625, %v1156_v61 }
 0x2ec   : > { %v1170_v63 = vadd.f32 1e-05, %v1166_v62 }
 0x2ed   : > { %v1159_v0 = vpop.xlane.xlu1 %1158  ;;  %v1162_v2 = vpop.xlane.xlu0 %1161 }
 0x2ee   : > { %v1167_v1 = vmul.f32 0.00390625, %v1159_v0  ;;  %1781 = vrsqrt.f32 %v1170_v63  ;;  %v1168_v3 = vmul.f32 0.00390625, %v1162_v2 }
 0x2f0   : > { %v1171_v4 = vadd.f32 1e-05, %v1167_v1  ;;  %v1172_v5 = vadd.f32 1e-05, %v1168_v3 }
 0x2f1   : > { %v1165_v6 = vpop.xlane.xlu1 %1164 }
 0x2f2   : > { %1783 = vrsqrt.f32 %v1171_v4  ;;  %v1169_v7 = vmul.f32 0.00390625, %v1165_v6 }
 0x2f3   : > { %1785 = vrsqrt.f32 %v1172_v5 }
 0x2f4   : > { %v1173_v8 = vadd.f32 1e-05, %v1169_v7 }
 0x2f6   : > { %1787 = vrsqrt.f32 %v1173_v8 }
 0x2f8   : > { %v1782_v13 = vpop.eup %1781 }
 0x2f9   : > { %v1178_v16 = vmul.f32 %v1782_v13, %v1138_v35  ;;  %v1179_v17 = vmul.f32 %v1782_v13, %v1139_v36 }
 0x2fb   : > { %v1198_v19 = vmul.f32 %v1191_v11, %v1178_v16  ;;  %v1199_v20 = vmul.f32 %v1195_v12, %v1179_v17 }
 0x2fc   : > { %v1784_v18 = vpop.eup %1783 }
 0x2fd   : > { %v1786_v21 = vpop.eup %1785  ;;  %v1180_v24 = vmul.f32 %v1784_v18, %v1140_v47  ;;  %v1181_v25 = vmul.f32 %v1784_v18, %v1141_v48  ;;  %v1218_v26 = vadd.f32 %v1211_v14, %v1198_v19  ;;  %v1219_v27 = vadd.f32 %v1215_v15, %v1199_v20 }
 0x2fe   : > { %v1182_v28 = vmul.f32 %v1786_v21, %v1142_v37  ;;  %v1183_v29 = vmul.f32 %v1786_v21, %v1143_v38 }
 0x2ff   : > { %v1200_v30 = vmul.f32 %v1191_v11, %v1180_v24  ;;  %v1201_v31 = vmul.f32 %v1195_v12, %v1181_v25  ;;  %v1234_v32 = vadd.f32 %v1226_v22, %v1218_v26  ;;  %v1235_v52 = vadd.f32 %v1227_v23, %v1219_v27 }
 0x300   : > { %v1788_v49 = vpop.eup %1787  ;;  %v1202_v35 = vmul.f32 %v1191_v11, %v1182_v28  ;;  %v1203_v36 = vmul.f32 %v1195_v12, %v1183_v29 }
 0x301   : > { %v1220_v39 = vadd.f32 %v1211_v14, %v1200_v30  ;;  %v1221_v40 = vadd.f32 %v1215_v15, %v1201_v31  ;;  %v1184_v43 = vmul.f32 %v1788_v49, %v2201_v45  ;;  %v1185_v44 = vmul.f32 %v1788_v49, %v2203_v46  ;;  %1242 = vst [vmem:[%s299_s17] sm:$0xff] %v1234_v32 }
 0x302   : > { %1243 = vst [vmem:[%s299_s17 + $0x8] sm:$0xff] %v1235_v52  ;;  %v1222_v37 = vadd.f32 %v1211_v14, %v1202_v35  ;;  %v1223_v38 = vadd.f32 %v1215_v15, %v1203_v36 }
 0x303   : > { %v1236_v47 = vadd.f32 %v1228_v33, %v1220_v39  ;;  %v1237_v48 = vadd.f32 %v1229_v34, %v1221_v40  ;;  %v1204_v50 = vmul.f32 %v1191_v11, %v1184_v43  ;;  %v1205_v51 = vmul.f32 %v1195_v12, %v1185_v44 }
 0x304   : > { %v1238_v53 = vadd.f32 %v1230_v41, %v1222_v37  ;;  %v1239_v54 = vadd.f32 %v1231_v42, %v1223_v38 }
 0x305   : > { %1244 = vst [vmem:[%s299_s17 + $0x10] sm:$0xff] %v1236_v47  ;;  %1245 = vst [vmem:[%s299_s17 + $0x18] sm:$0xff] %v1237_v48  ;;  %v1224_v45 = vadd.f32 %v1211_v14, %v1204_v50  ;;  %v1225_v46 = vadd.f32 %v1215_v15, %v1205_v51 }
 0x306   : > { %1246 = vst [vmem:[%s299_s17 + $0x20] sm:$0xff] %v1238_v53  ;;  %1247 = vst [vmem:[%s299_s17 + $0x28] sm:$0xff] %v1239_v54 }
 0x307   : > { %v1240_v57 = vadd.f32 %v1232_v55, %v1224_v45  ;;  %v1241_v58 = vadd.f32 %v1233_v56, %v1225_v46 }
 0x309   : > { %1248 = vst [vmem:[%s299_s17 + $0x30] sm:$0xff] %v1240_v57  ;;  %1249 = vst [vmem:[%s299_s17 + $0x38] sm:$0xff] %v1241_v58 }
 0x30a   : > { %1888 = shalt.err (!%p1885_p2)
}
 0x30b   : > { %s1889_s7 = scalar_lea.hbm %s2226_s16, 1024  ;;  %s1893_s13 = scalar_lea.hbm %s2278_s6, 2048 }
 0x30c   : > { %p1890_p13 = scmp.ne.s32.totalorder %s2226_s16, %s1889_s7  ;;  %p1894_p4 = scmp.lt.u32.totalorder %s2226_s16, %s2278_s6 }
 0x30d   : > { %p1895_p7 = scmp.lt.u32.totalorder %s1893_s13, %s1889_s7  ;;  %p1897_p11 = scmp.lt.u32.totalorder %s1889_s7, %s2226_s16 }
 0x30e   : > { %p1891_p6 = pnand %p1890_p13, %p2292_p0 }
 0x30f   : > { %p1896_p8 = por %p1895_p7, %p1894_p4 }
 0x310   : > { %p1892_p10 = pneg %p1891_p6 }
 0x311   : > { %p1898_p1 = por %p1897_p11, %p1896_p8 }
 0x313   : > { %p1899_p3 = pnand %p1898_p1, %p1892_p10 }
 0x315   : > { %1902 = shalt.err (!%p1899_p3)
}
 0x316   : > { %s1957_s9 = smov 256   ;;  %s1958_s15 = smov 16  }
 0x317   : > { %1554 = dma.vmem_to_hbm [thread:$0]  (%p2292_p0), %s2228_s20, 1024, %s2226_s16, %s1251_s25, %s1957_s9, %s1957_s9, %s1958_s15  }
 0x318 PF: > { %s1280_s8 = sand.u32 1, %s1933_s21   ;;  %p2293_p5 = scmp.ne.s32.totalorder %s2283_s28, 0 }
 0x319   : > { %p2294_p9 = scmp.ge.s32.totalorder %s1945_s24, 2  ;;  %s1281_s27 = scalar_lea.sflag [#allocation4], %s1280_s8 }
 0x31b   : > { %p1568_p12 = pnand %p2294_p9, %p2293_p5 }
 0x31d   : > { %1928 = dma.done.wait (!%p1568_p12), %s1281_s27, 1024  }
 0x31e   : > { %1930 = vsyncadd (!%p1568_p12), %s1281_s27, 4294966272  ;;  %p20_p2 = scmp.ge.s32.totalorder %s2104_s26, 4   ;;  %s2295_s21 = smov %s1937_s22 }
 0x31f   : > { %s2296_s22 = smov %s1941_s23  ;;  %s2297_s23 = smov %s2113_s11 }
 0x320   : > { %s2298_s24 = smov %s2104_s26  ;;  %22 = sbr.rel (!%p20_p2) target bundleno = 6 (0x6), region = 97 }
 0x327   :  { %1286 = vsyncpa [#allocation3], 1 }
 0x328   :  { %1288 = vsyncpa [#allocation3 + $0x1], 1 }
 0x329   :  { %1289 = vsyncpa [#allocation6], 1 }
 0x32a   :  { %1290 = vsyncpa [#allocation4], 1 }
 0x32b   :  { %1292 = vsyncpa [#allocation4 + $0x1], 1 }

</bundles_post_ra>
